<compile_context>
chip_gen: v7x
topology: tpu7x:2x2x1
jax: 0.10.0
libtpu: 0.0.40
codegen_flags: <defaults>
</compile_context>

<pallas_src>
import jax
import jax.numpy as jnp
from jax import lax
from jax.experimental import pallas as pl
from jax.experimental.pallas import tpu as pltpu


def _film_kernel(x_ref, task_ref, w1_ref, b1_ref, w2_ref, b2_ref,
                 wgb_ref, bgb_ref, o_ref):
    """One batch element per grid step.

    x_ref    : (1, H, W*Cin)        input row-major in (y), cols = (x, ci)
    task_ref : (1, 1, T)
    w1_ref   : (3, W*Cin,  W*Cmid)  conv1 band weights, one matrix per dy tap
    b1_ref   : (1, W*Cmid)          conv1 bias tiled across W
    w2_ref   : (3, W*Cmid, W*Cout)  conv2 band weights
    b2_ref   : (1, W*Cout)
    wgb_ref  : (T, 2*W*Cout)        [gamma | beta] linear weights tiled across W
    bgb_ref  : (1, 2*W*Cout)
    o_ref    : (1, H, W*Cout)       lane-dense output block
    """
    H = o_ref.shape[1]
    wcout = b2_ref.shape[1]

    # (H, H) shift matrices: sdn @ v -> row y holds v[y-1] (zero at y=0),
    # sup @ v -> row y holds v[y+1] (zero at y=H-1).  These implement the
    # conv zero-padding along y exactly, on the (nearly idle) MXU, avoiding
    # any sublane shuffles, halo buffers or masked stores.
    row = lax.broadcasted_iota(jnp.int32, (H, H), 0)
    col = lax.broadcasted_iota(jnp.int32, (H, H), 1)
    sdn = (row == col + 1).astype(jnp.float32)
    sup = (row + 1 == col).astype(jnp.float32)

    def conv3x3(a, wband_ref, bias_ref):
        # a: (H, W*ci).  x taps live in the band weights; y taps come from
        # the shift matmuls.  Result (H, W*co) is already lane-dense.
        a_um1 = jnp.dot(sdn, a, preferred_element_type=jnp.float32)  # a[y-1]
        a_up1 = jnp.dot(sup, a, preferred_element_type=jnp.float32)  # a[y+1]
        acc = jnp.dot(a_um1, wband_ref[0], preferred_element_type=jnp.float32)
        acc = acc + jnp.dot(a, wband_ref[1], preferred_element_type=jnp.float32)
        acc = acc + jnp.dot(a_up1, wband_ref[2], preferred_element_type=jnp.float32)
        return acc + bias_ref[...]

    h1 = jnp.maximum(conv3x3(x_ref[0], w1_ref, b1_ref), 0.0)   # (H, W*Cmid)
    c2 = conv3x3(h1, w2_ref, b2_ref)                           # (H, W*Cout)

    # FiLM gamma/beta (weights pre-tiled across W -> lane-dense modulation).
    gb = jnp.dot(task_ref[0], wgb_ref[...], preferred_element_type=jnp.float32)
    gb = gb + bgb_ref[...]                                     # (1, 2*W*Cout)
    gamma = gb[:, :wcout]
    beta = gb[:, wcout:]

    # Dense (H, W*Cout) elementwise + single unmasked store.
    o_ref[0] = jnp.maximum(c2 * gamma + beta, 0.0)


def _band_weights(w_hwio, W):
    """(3, 3, ci, co) HWIO conv weight -> (3, W*ci, W*co) banded matrices.

    band[dy][xx*ci + i, x*co + j] = w[dy, xx - x + 1, i, j] for |xx - x| <= 1.
    Right-multiplying the (rows=(b,y), cols=(x,ci)) activation slab by
    band[dy] applies all three dx taps (including x zero-padding) at once and
    emits cols=(x,co) directly, i.e. the matmul output is already laid out
    lane-dense -- no im2col and no output relayout.
    """
    bands = []
    for dy in range(3):
        m = None
        for dx in range(3):
            sel = jnp.eye(W, k=1 - dx, dtype=w_hwio.dtype)  # S[xx,x]=1 iff xx=x+dx-1
            term = jnp.kron(sel, w_hwio[dy, dx])
            m = term if m is None else m + term
        bands.append(m)
    return jnp.stack(bands, axis=0)


def film_forward_nhwc(x_nhwc, task, params):
    """x_nhwc: (B, H, W, Cin) float32; task: (B, T) float32."""
    w1, b1, w2, b2, wg, bg, wb, bb = params
    B, H, W, Cin = x_nhwc.shape
    Cmid = w1.shape[-1]
    Cout = w2.shape[-1]
    T = task.shape[-1]
    WCin, WCmid, WCout = W * Cin, W * Cmid, W * Cout

    # Only activation prep left in XLA: a contiguous reshape (no pad, no
    # transpose, no im2col).  Conv padding is handled inside the kernel.
    x2d = x_nhwc.reshape(B, H, WCin)
    task3 = task[:, None, :]                                   # (B, 1, T)

    # Weight prep (in a real module these are precomputed once per param set).
    w1b = _band_weights(w1, W)                                 # (3, WCin,  WCmid)
    w2b = _band_weights(w2, W)                                 # (3, WCmid, WCout)
    b1w = jnp.tile(b1.reshape(1, Cmid), (1, W))                # (1, WCmid)
    b2w = jnp.tile(b2.reshape(1, Cout), (1, W))                # (1, WCout)
    wgb = jnp.concatenate([jnp.tile(wg, (1, W)),
                           jnp.tile(wb, (1, W))], axis=-1)     # (T, 2*WCout)
    bgb = jnp.concatenate([jnp.tile(bg.reshape(1, Cout), (1, W)),
                           jnp.tile(bb.reshape(1, Cout), (1, W))], axis=-1)

    flops_per_b = (2 * H * H * (WCin + WCmid) * 2              # shift matmuls
                   + 2 * H * WCin * WCmid * 3                  # conv1 bands
                   + 2 * H * WCmid * WCout * 3                 # conv2 bands
                   + 2 * T * 2 * WCout)                        # gamma|beta
    flops = B * flops_per_b
    bytes_accessed = 4 * (x2d.size + task3.size + w1b.size + b1w.size
                          + w2b.size + b2w.size + wgb.size + bgb.size
                          + B * H * WCout)

    out = pl.pallas_call(
        _film_kernel,
        out_shape=jax.ShapeDtypeStruct((B, H, WCout), jnp.float32),
        grid=(B,),
        in_specs=[
            pl.BlockSpec((1, H, WCin), lambda b: (b, 0, 0)),
            pl.BlockSpec((1, 1, T), lambda b: (b, 0, 0)),
            pl.BlockSpec((3, WCin, WCmid), lambda b: (0, 0, 0)),
            pl.BlockSpec((1, WCmid), lambda b: (0, 0)),
            pl.BlockSpec((3, WCmid, WCout), lambda b: (0, 0, 0)),
            pl.BlockSpec((1, WCout), lambda b: (0, 0)),
            pl.BlockSpec((T, 2 * WCout), lambda b: (0, 0)),
            pl.BlockSpec((1, 2 * WCout), lambda b: (0, 0)),
        ],
        out_specs=pl.BlockSpec((1, H, WCout), lambda b: (b, 0, 0)),
        compiler_params=pltpu.CompilerParams(
            dimension_semantics=("parallel",)),
        cost_estimate=pl.CostEstimate(flops=int(flops), transcendentals=0,
                                      bytes_accessed=int(bytes_accessed)),
    )(x2d, task3, w1b, b1w, w2b, b2w, wgb, bgb)

    # (B, H, W*Cout) -> (B, H, W, Cout)
    return out.reshape(B, H, W, Cout)


def film_forward_nchw(x_nchw, task, params):
    """PyTorch-convention entry point (NCHW in, NCHW out)."""
    x_nhwc = jnp.transpose(x_nchw, (0, 2, 3, 1))
    out_nhwc = film_forward_nhwc(x_nhwc, task, params)
    return jnp.transpose(out_nhwc, (0, 3, 1, 2))


def film_reference_nchw(x_nchw, task, params):
    """Pure-JAX reference mirroring the PyTorch forward."""
    w1, b1, w2, b2, wg, bg, wb, bb = params
    x = jnp.transpose(x_nchw, (0, 2, 3, 1))  # NHWC
    dn = ('NHWC', 'HWIO', 'NHWC')
    h = lax.conv_general_dilated(x, w1, (1, 1), 'SAME', dimension_numbers=dn) + b1
    h = jnp.maximum(h, 0.0)
    c2 = lax.conv_general_dilated(h, w2, (1, 1), 'SAME', dimension_numbers=dn) + b2
    gamma = task @ wg + bg  # (B, Cout)
    beta = task @ wb + bb
    out = c2 * gamma[:, None, None, :] + beta[:, None, None, :]
    out = jnp.maximum(out, 0.0)
    return jnp.transpose(out, (0, 3, 1, 2))


def make_params(key, task_dim, out_features, in_channels, mid_channels):
    ks = jax.random.split(key, 8)
    scale = 0.1
    w1 = scale * jax.random.normal(ks[0], (3, 3, in_channels, mid_channels), jnp.float32)
    b1 = scale * jax.random.normal(ks[1], (1, mid_channels), jnp.float32)
    w2 = scale * jax.random.normal(ks[2], (3, 3, mid_channels, out_features), jnp.float32)
    b2 = scale * jax.random.normal(ks[3], (1, out_features), jnp.float32)
    wg = scale * jax.random.normal(ks[4], (task_dim, out_features), jnp.float32)
    bg = scale * jax.random.normal(ks[5], (1, out_features), jnp.float32)
    wb = scale * jax.random.normal(ks[6], (task_dim, out_features), jnp.float32)
    bb = scale * jax.random.normal(ks[7], (1, out_features), jnp.float32)
    return (w1, b1, w2, b2, wg, bg, wb, bb)


if __name__ == "__main__":
    # Shapes consistent with FiLM(task_dim, out_features, in_channels, mid_channels).
    # W * Cout = 128 -> the output slab and FiLM modulation are fully lane-dense.
    B, Cin, H, W = 2, 4, 8, 8
    Cmid, Cout, T = 8, 16, 32

    key = jax.random.PRNGKey(0)
    k_x, k_t, k_p = jax.random.split(key, 3)

    x = jax.random.normal(k_x, (B, Cin, H, W), jnp.float32)   # PyTorch NCHW conv input
    task = jax.random.normal(k_t, (B, T), jnp.float32)
    params = make_params(k_p, T, Cout, Cin, Cmid)

    fwd = jax.jit(film_forward_nchw)
    out = jax.block_until_ready(fwd(x, task, params))

    ref = jax.block_until_ready(film_reference_nchw(x, task, params))
    assert out.shape == (B, Cout, H, W)
    assert jnp.allclose(out, ref, atol=1e-4, rtol=1e-4), "Pallas kernel mismatch vs reference"

    print("KERNEL_OK")
</pallas_src>

<mosaic_0001>
module attributes {stable_mosaic.version = 11 : i64} {
  func.func @_film_kernel(%arg0: i32, %arg1: memref<1x8x32xf32, #tpu.memory_space<vmem>>, %arg2: memref<1x1x32xf32, #tpu.memory_space<vmem>>, %arg3: memref<3x32x64xf32, #tpu.memory_space<vmem>>, %arg4: memref<1x64xf32, #tpu.memory_space<vmem>>, %arg5: memref<3x64x128xf32, #tpu.memory_space<vmem>>, %arg6: memref<1x128xf32, #tpu.memory_space<vmem>>, %arg7: memref<32x256xf32, #tpu.memory_space<vmem>>, %arg8: memref<1x256xf32, #tpu.memory_space<vmem>>, %arg9: memref<1x8x128xf32, #tpu.memory_space<vmem>>) attributes {dimension_semantics = [#tpu.dimension_semantics<parallel>], iteration_bounds = array<i64: 2>, scalar_prefetch = 0 : i64, scratch_operands = 0 : i64, tpu.core_type = #tpu.core_type<tc>, window_params = [{transform_indices = @transform_0, window_bounds = array<i64: 1, 8, 32>}, {transform_indices = @transform_1, window_bounds = array<i64: 1, 1, 32>}, {pipeline_mode = #tpu.pipeline_mode<synchronous>, transform_indices = @transform_2, window_bounds = array<i64: 3, 32, 64>}, {pipeline_mode = #tpu.pipeline_mode<synchronous>, transform_indices = @transform_3, window_bounds = array<i64: 1, 64>}, {pipeline_mode = #tpu.pipeline_mode<synchronous>, transform_indices = @transform_4, window_bounds = array<i64: 3, 64, 128>}, {pipeline_mode = #tpu.pipeline_mode<synchronous>, transform_indices = @transform_5, window_bounds = array<i64: 1, 128>}, {pipeline_mode = #tpu.pipeline_mode<synchronous>, transform_indices = @transform_6, window_bounds = array<i64: 32, 256>}, {pipeline_mode = #tpu.pipeline_mode<synchronous>, transform_indices = @transform_7, window_bounds = array<i64: 1, 256>}, {transform_indices = @transform_8, window_bounds = array<i64: 1, 8, 128>}]} {
    %0 = tpu.iota {dimensions = array<i32: 0>} : vector<8x8xi32>
    %1 = tpu.iota {dimensions = array<i32: 1>} : vector<8x8xi32>
    %c1_i32 = arith.constant 1 : i32
    %2 = vector.broadcast %c1_i32 : i32 to vector<8x8xi32>
    %3 = arith.addi %1, %2 : vector<8x8xi32>
    %4 = arith.cmpi eq, %0, %3 : vector<8x8xi32>
    %5 = arith.extui %4 : vector<8x8xi1> to vector<8x8xi32>
    %6 = arith.sitofp %5 : vector<8x8xi32> to vector<8x8xf32>
    %c1_i32_0 = arith.constant 1 : i32
    %7 = vector.broadcast %c1_i32_0 : i32 to vector<8x8xi32>
    %8 = arith.addi %0, %7 : vector<8x8xi32>
    %9 = arith.cmpi eq, %8, %1 : vector<8x8xi32>
    %10 = arith.extui %9 : vector<8x8xi1> to vector<8x8xi32>
    %11 = arith.sitofp %10 : vector<8x8xi32> to vector<8x8xf32>
    %c0 = arith.constant 0 : index
    %c0_1 = arith.constant 0 : index
    %c0_2 = arith.constant 0 : index
    %12 = vector.load %arg1[%c0, %c0_1, %c0_2] : memref<1x8x32xf32, #tpu.memory_space<vmem>>, vector<1x8x32xf32>
    %13 = vector.shape_cast %12 : vector<1x8x32xf32> to vector<8x32xf32>
    %cst = arith.constant dense<0.000000e+00> : vector<8x32xf32>
    %14 = tpu.matmul %6, %13, %cst {dimension_numbers = #tpu.dot_dimension_numbers<[1], [0], [0], [1], [0, 0, 1, 1], [], []>} : vector<8x8xf32>, vector<8x32xf32>, vector<8x32xf32> -> vector<8x32xf32>
    %cst_3 = arith.constant dense<0.000000e+00> : vector<8x32xf32>
    %15 = tpu.matmul %11, %13, %cst_3 {dimension_numbers = #tpu.dot_dimension_numbers<[1], [0], [0], [1], [0, 0, 1, 1], [], []>} : vector<8x8xf32>, vector<8x32xf32>, vector<8x32xf32> -> vector<8x32xf32>
    %c0_4 = arith.constant 0 : index
    %c0_5 = arith.constant 0 : index
    %c0_6 = arith.constant 0 : index
    %16 = vector.load %arg3[%c0_4, %c0_5, %c0_6] : memref<3x32x64xf32, #tpu.memory_space<vmem>>, vector<1x32x64xf32>
    %17 = vector.shape_cast %16 : vector<1x32x64xf32> to vector<32x64xf32>
    %cst_7 = arith.constant dense<0.000000e+00> : vector<8x64xf32>
    %18 = tpu.matmul %14, %17, %cst_7 {dimension_numbers = #tpu.dot_dimension_numbers<[1], [0], [0], [1], [0, 0, 1, 1], [], []>} : vector<8x32xf32>, vector<32x64xf32>, vector<8x64xf32> -> vector<8x64xf32>
    %c1 = arith.constant 1 : index
    %c0_8 = arith.constant 0 : index
    %c0_9 = arith.constant 0 : index
    %19 = vector.load %arg3[%c1, %c0_8, %c0_9] : memref<3x32x64xf32, #tpu.memory_space<vmem>>, vector<1x32x64xf32>
    %20 = vector.shape_cast %19 : vector<1x32x64xf32> to vector<32x64xf32>
    %cst_10 = arith.constant dense<0.000000e+00> : vector<8x64xf32>
    %21 = tpu.matmul %13, %20, %cst_10 {dimension_numbers = #tpu.dot_dimension_numbers<[1], [0], [0], [1], [0, 0, 1, 1], [], []>} : vector<8x32xf32>, vector<32x64xf32>, vector<8x64xf32> -> vector<8x64xf32>
    %22 = arith.addf %18, %21 : vector<8x64xf32>
    %c2 = arith.constant 2 : index
    %c0_11 = arith.constant 0 : index
    %c0_12 = arith.constant 0 : index
    %23 = vector.load %arg3[%c2, %c0_11, %c0_12] : memref<3x32x64xf32, #tpu.memory_space<vmem>>, vector<1x32x64xf32>
    %24 = vector.shape_cast %23 : vector<1x32x64xf32> to vector<32x64xf32>
    %cst_13 = arith.constant dense<0.000000e+00> : vector<8x64xf32>
    %25 = tpu.matmul %15, %24, %cst_13 {dimension_numbers = #tpu.dot_dimension_numbers<[1], [0], [0], [1], [0, 0, 1, 1], [], []>} : vector<8x32xf32>, vector<32x64xf32>, vector<8x64xf32> -> vector<8x64xf32>
    %26 = arith.addf %22, %25 : vector<8x64xf32>
    %c0_14 = arith.constant 0 : index
    %c0_15 = arith.constant 0 : index
    %27 = vector.load %arg4[%c0_14, %c0_15] : memref<1x64xf32, #tpu.memory_space<vmem>>, vector<1x64xf32>
    %28 = vector.broadcast %27 : vector<1x64xf32> to vector<8x64xf32>
    %29 = arith.addf %26, %28 : vector<8x64xf32>
    %cst_16 = arith.constant 0.000000e+00 : f32
    %30 = vector.broadcast %cst_16 : f32 to vector<8x64xf32>
    %31 = arith.maximumf %29, %30 : vector<8x64xf32>
    %cst_17 = arith.constant dense<0.000000e+00> : vector<8x64xf32>
    %32 = tpu.matmul %6, %31, %cst_17 {dimension_numbers = #tpu.dot_dimension_numbers<[1], [0], [0], [1], [0, 0, 1, 1], [], []>} : vector<8x8xf32>, vector<8x64xf32>, vector<8x64xf32> -> vector<8x64xf32>
    %cst_18 = arith.constant dense<0.000000e+00> : vector<8x64xf32>
    %33 = tpu.matmul %11, %31, %cst_18 {dimension_numbers = #tpu.dot_dimension_numbers<[1], [0], [0], [1], [0, 0, 1, 1], [], []>} : vector<8x8xf32>, vector<8x64xf32>, vector<8x64xf32> -> vector<8x64xf32>
    %c0_19 = arith.constant 0 : index
    %c0_20 = arith.constant 0 : index
    %c0_21 = arith.constant 0 : index
    %34 = vector.load %arg5[%c0_19, %c0_20, %c0_21] : memref<3x64x128xf32, #tpu.memory_space<vmem>>, vector<1x64x128xf32>
    %35 = vector.shape_cast %34 : vector<1x64x128xf32> to vector<64x128xf32>
    %cst_22 = arith.constant dense<0.000000e+00> : vector<8x128xf32>
    %36 = tpu.matmul %32, %35, %cst_22 {dimension_numbers = #tpu.dot_dimension_numbers<[1], [0], [0], [1], [0, 0, 1, 1], [], []>} : vector<8x64xf32>, vector<64x128xf32>, vector<8x128xf32> -> vector<8x128xf32>
    %c1_23 = arith.constant 1 : index
    %c0_24 = arith.constant 0 : index
    %c0_25 = arith.constant 0 : index
    %37 = vector.load %arg5[%c1_23, %c0_24, %c0_25] : memref<3x64x128xf32, #tpu.memory_space<vmem>>, vector<1x64x128xf32>
    %38 = vector.shape_cast %37 : vector<1x64x128xf32> to vector<64x128xf32>
    %cst_26 = arith.constant dense<0.000000e+00> : vector<8x128xf32>
    %39 = tpu.matmul %31, %38, %cst_26 {dimension_numbers = #tpu.dot_dimension_numbers<[1], [0], [0], [1], [0, 0, 1, 1], [], []>} : vector<8x64xf32>, vector<64x128xf32>, vector<8x128xf32> -> vector<8x128xf32>
    %40 = arith.addf %36, %39 : vector<8x128xf32>
    %c2_27 = arith.constant 2 : index
    %c0_28 = arith.constant 0 : index
    %c0_29 = arith.constant 0 : index
    %41 = vector.load %arg5[%c2_27, %c0_28, %c0_29] : memref<3x64x128xf32, #tpu.memory_space<vmem>>, vector<1x64x128xf32>
    %42 = vector.shape_cast %41 : vector<1x64x128xf32> to vector<64x128xf32>
    %cst_30 = arith.constant dense<0.000000e+00> : vector<8x128xf32>
    %43 = tpu.matmul %33, %42, %cst_30 {dimension_numbers = #tpu.dot_dimension_numbers<[1], [0], [0], [1], [0, 0, 1, 1], [], []>} : vector<8x64xf32>, vector<64x128xf32>, vector<8x128xf32> -> vector<8x128xf32>
    %44 = arith.addf %40, %43 : vector<8x128xf32>
    %c0_31 = arith.constant 0 : index
    %c0_32 = arith.constant 0 : index
    %45 = vector.load %arg6[%c0_31, %c0_32] : memref<1x128xf32, #tpu.memory_space<vmem>>, vector<1x128xf32>
    %46 = vector.broadcast %45 : vector<1x128xf32> to vector<8x128xf32>
    %47 = arith.addf %44, %46 : vector<8x128xf32>
    %c0_33 = arith.constant 0 : index
    %c0_34 = arith.constant 0 : index
    %c0_35 = arith.constant 0 : index
    %48 = vector.load %arg2[%c0_33, %c0_34, %c0_35] : memref<1x1x32xf32, #tpu.memory_space<vmem>>, vector<1x1x32xf32>
    %49 = vector.shape_cast %48 : vector<1x1x32xf32> to vector<1x32xf32>
    %c0_36 = arith.constant 0 : index
    %c0_37 = arith.constant 0 : index
    %50 = vector.load %arg7[%c0_36, %c0_37] : memref<32x256xf32, #tpu.memory_space<vmem>>, vector<32x256xf32>
    %cst_38 = arith.constant dense<0.000000e+00> : vector<1x256xf32>
    %51 = tpu.matmul %49, %50, %cst_38 {dimension_numbers = #tpu.dot_dimension_numbers<[1], [0], [0], [1], [0, 0, 1, 1], [], []>} : vector<1x32xf32>, vector<32x256xf32>, vector<1x256xf32> -> vector<1x256xf32>
    %c0_39 = arith.constant 0 : index
    %c0_40 = arith.constant 0 : index
    %52 = vector.load %arg8[%c0_39, %c0_40] : memref<1x256xf32, #tpu.memory_space<vmem>>, vector<1x256xf32>
    %53 = arith.addf %51, %52 : vector<1x256xf32>
    %54 = vector.extract_strided_slice %53 {offsets = [0, 0], sizes = [1, 128], strides = [1, 1]} : vector<1x256xf32> to vector<1x128xf32>
    %55 = vector.extract_strided_slice %53 {offsets = [0, 128], sizes = [1, 128], strides = [1, 1]} : vector<1x256xf32> to vector<1x128xf32>
    %56 = vector.broadcast %54 : vector<1x128xf32> to vector<8x128xf32>
    %57 = arith.mulf %47, %56 : vector<8x128xf32>
    %58 = vector.broadcast %55 : vector<1x128xf32> to vector<8x128xf32>
    %59 = arith.addf %57, %58 : vector<8x128xf32>
    %cst_41 = arith.constant 0.000000e+00 : f32
    %60 = vector.broadcast %cst_41 : f32 to vector<8x128xf32>
    %61 = arith.maximumf %59, %60 : vector<8x128xf32>
    %c0_42 = arith.constant 0 : index
    %c0_43 = arith.constant 0 : index
    %c0_44 = arith.constant 0 : index
    %62 = vector.load %arg9[%c0_42, %c0_43, %c0_44] : memref<1x8x128xf32, #tpu.memory_space<vmem>>, vector<1x8x128xf32>
    %63 = vector.shape_cast %62 : vector<1x8x128xf32> to vector<8x128xf32>
    %64 = vector.shape_cast %61 : vector<8x128xf32> to vector<1x8x128xf32>
    tpu.vector_store %arg9[%c0_42, %c0_43, %c0_44], %64 {strides = array<i32>} : memref<1x8x128xf32, #tpu.memory_space<vmem>>, vector<1x8x128xf32>,
    return
  }
  func.func @transform_0(%arg0: i32) -> (i32, i32, i32) {
    %c0_i32 = arith.constant 0 : i32
    %c0_i32_0 = arith.constant 0 : i32
    %c0_i32_1 = arith.constant 0 : i32
    return %arg0, %c0_i32, %c0_i32_0 : i32, i32, i32
  }
  func.func @transform_1(%arg0: i32) -> (i32, i32, i32) {
    %c0_i32 = arith.constant 0 : i32
    %c0_i32_0 = arith.constant 0 : i32
    %c0_i32_1 = arith.constant 0 : i32
    return %arg0, %c0_i32, %c0_i32_0 : i32, i32, i32
  }
  func.func @transform_2(%arg0: i32) -> (i32, i32, i32) {
    %c0_i32 = arith.constant 0 : i32
    %c0_i32_0 = arith.constant 0 : i32
    %c0_i32_1 = arith.constant 0 : i32
    %c0_i32_2 = arith.constant 0 : i32
    return %c0_i32, %c0_i32_0, %c0_i32_1 : i32, i32, i32
  }
  func.func @transform_3(%arg0: i32) -> (i32, i32) {
    %c0_i32 = arith.constant 0 : i32
    %c0_i32_0 = arith.constant 0 : i32
    %c0_i32_1 = arith.constant 0 : i32
    return %c0_i32, %c0_i32_0 : i32, i32
  }
  func.func @transform_4(%arg0: i32) -> (i32, i32, i32) {
    %c0_i32 = arith.constant 0 : i32
    %c0_i32_0 = arith.constant 0 : i32
    %c0_i32_1 = arith.constant 0 : i32
    %c0_i32_2 = arith.constant 0 : i32
    return %c0_i32, %c0_i32_0, %c0_i32_1 : i32, i32, i32
  }
  func.func @transform_5(%arg0: i32) -> (i32, i32) {
    %c0_i32 = arith.constant 0 : i32
    %c0_i32_0 = arith.constant 0 : i32
    %c0_i32_1 = arith.constant 0 : i32
    return %c0_i32, %c0_i32_0 : i32, i32
  }
  func.func @transform_6(%arg0: i32) -> (i32, i32) {
    %c0_i32 = arith.constant 0 : i32
    %c0_i32_0 = arith.constant 0 : i32
    %c0_i32_1 = arith.constant 0 : i32
    return %c0_i32, %c0_i32_0 : i32, i32
  }
  func.func @transform_7(%arg0: i32) -> (i32, i32) {
    %c0_i32 = arith.constant 0 : i32
    %c0_i32_0 = arith.constant 0 : i32
    %c0_i32_1 = arith.constant 0 : i32
    return %c0_i32, %c0_i32_0 : i32, i32
  }
  func.func @transform_8(%arg0: i32) -> (i32, i32, i32) {
    %c0_i32 = arith.constant 0 : i32
    %c0_i32_0 = arith.constant 0 : i32
    %c0_i32_1 = arith.constant 0 : i32
    return %arg0, %c0_i32, %c0_i32_0 : i32, i32, i32
  }
}

</mosaic_0001>

<bundles_post_ra>
// kernel: film_forward_nchw.1
= control target key start
LH: loop header
LB: loop body
LE: loop exit
PB: predicated region body
PF: predicated region fallthrough
CT: control target
= control target key end

     0   :  { %s1620_s27 = smov 0   ;;  %s1859_s0 = inlined_call_operand.vmem [shape: f32[2,8,32], index: 0, kind: input, shape index: {}]   ;;  %s1860_s1 = inlined_call_operand.vmem [shape: f32[2,1,32], index: 1, kind: input, shape index: {}]   ;;  %s1861_s2 = inlined_call_operand.vmem [shape: f32[3,32,64], index: 2, kind: input, shape index: {}]   ;;  %s1862_s3 = inlined_call_operand.vmem [shape: f32[1,64], index: 3, kind: input, shape index: {}]   ;;  %s1863_s4 = inlined_call_operand.vmem [shape: f32[3,64,128], index: 4, kind: input, shape index: {}]   ;;  %s1864_s5 = inlined_call_operand.vmem [shape: f32[1,128], index: 5, kind: input, shape index: {}]   ;;  %s1865_s6 = inlined_call_operand.vmem [shape: f32[32,256], index: 6, kind: input, shape index: {}]   ;;  %s1866_s7 = inlined_call_operand.vmem [shape: f32[1,256], index: 7, kind: input, shape index: {}]   ;;  %s1867_s8 = inlined_call_operand.vmem [shape: f32[2,8,128], index: 8, kind: output, shape index: {}]  }
   0x1 LB: > { %s1283_s28 = sadd.s32 4294967295, %s1570_s27   ;;  %p1287_p0 = scmp.ge.s32.totalorder %s1570_s27, 1  ;;  %s1570_s27 = sphi %s1620_s27, %s18_s27  }
   0x2   : > { %p269_p1 = scmp.lt.s32.totalorder %s1570_s27, 3 }
   0x4   : > { %p270_p2 = pnand %p1287_p0, %p269_p1 }
   0x5   : > { %p304_p3 = scmp.lt.s32.totalorder (!%p270_p2), %s1283_s28, 1  ;;  %v315_v0 = vlaneseq (!%p270_p2)  ;;  %v1294_v1 = vld [vmem:[%s1861_s2 + $0x20] sm:$0xff] (!%p270_p2)  ;;  %v1295_v2 = vld [vmem:[%s1861_s2 + $0x28] sm:$0xff] (!%p270_p2)  ;;  %v1572_v3 = vmov (!%p270_p2), 0.0   ;;  %vm1573_vm0 = vmmov (!%p270_p2), 0   ;;  %v1296_v5 = vld [vmem:[%s1861_s2 + $0x30] sm:$0xff] (!%p270_p2) }
   0x6   : > { %273 = sbr.rel (%p270_p2) target bundleno = 896 (0x380), region = 52  ;;  %1381 = vmatprep.subr.mxu1 (!%p270_p2), %v1572_v3  ;;  %1383 = vmatprep.mubr.msk.f32.mxu1 (!%p270_p2), %vm1573_vm0, %v1572_v3  ;;  %v1492_v4 = vpack.c.bf16 (!%p270_p2), %v1295_v2, %v1294_v1  ;;  %v1297_v6 = vld [vmem:[%s1861_s2 + $0x38] sm:$0xff] (!%p270_p2)  ;;  %v1574_v9 = vmov (!%p270_p2), 0.0|0.0   ;;  %vm328_vm1 = vcmask (!%p270_p2), 64512   ;;  %v1300_v13 = vld [vmem:[%s1861_s2 + $0x40] sm:$0xff] (!%p270_p2)  ;;  %v1301_v14 = vld [vmem:[%s1861_s2 + $0x48] sm:$0xff] (!%p270_p2) }
   0x7   : > { %v1645_v7 = vshrl.u32 (!%p270_p2), %v315_v0, 7  ;;  %v318_v8 = vand.u32 (!%p270_p2), 127, %v315_v0  ;;  %1491 = vmatprep.subr.bf16.mxu0 (!%p270_p2), %v1574_v9  ;;  %1399 = vmatprep.mubr.msk.f32.mxu0 (!%p270_p2), %vm1573_vm0, %v1572_v3  ;;  %v1495_v10 = vpack.c.bf16 (!%p270_p2), %v1297_v6, %v1296_v5  ;;  %v475_v16 = vld [vmem:[%s1861_s2] sm:$0xff] (!%p270_p2)  ;;  %v476_v17 = vld [vmem:[%s1861_s2 + $0x8] sm:$0xff] (!%p270_p2)  ;;  %vm484_vm4 = vcmask (!%p270_p2), 261120   ;;  %v477_v22 = vld [vmem:[%s1861_s2 + $0x10] sm:$0xff] (!%p270_p2) }
   0x8   : > { %1493 = vmatpush3.bf16.msra.mxu0 (!%p270_p2), %v1492_v4  ;;  %v1504_v19 = vpack.c.bf16 (!%p270_p2), %v1301_v14, %v1300_v13  ;;  %v1498_v21 = vpack.c.bf16 (!%p270_p2), %v476_v17, %v475_v16  ;;  %v478_v23 = vld [vmem:[%s1861_s2 + $0x18] sm:$0xff] (!%p270_p2)  ;;  %v1302_v25 = vld [vmem:[%s1861_s2 + $0x50] sm:$0xff] (!%p270_p2)  ;;  %v1308_v28 = vld [vmem:[%s1863_s4 + $0x40] sm:$0xff] (!%p270_p2)  ;;  %vm876_vm5 = vcmask (!%p270_p2), 523264  }
   0x9   : > { %v319_v11 = vadd.s32 (!%p270_p2), 1, %v318_v8  ;;  %v323_v12 = vadd.s32 (!%p270_p2), 1, %v1645_v7  ;;  %1494 = vmatprep.subr.bf16.mxu0 (!%p270_p2), %v1574_v9  ;;  %v1501_v24 = vpack.c.bf16 (!%p270_p2), %v478_v23, %v477_v22  ;;  %v1303_v26 = vld [vmem:[%s1861_s2 + $0x58] sm:$0xff] (!%p270_p2)  ;;  %v1309_v29 = vld [vmem:[%s1863_s4 + $0x48] sm:$0xff] (!%p270_p2)  ;;  %v1310_v37 = vld [vmem:[%s1863_s4 + $0x50] sm:$0xff] (!%p270_p2) }
   0xa   : > { %v1507_v27 = vpack.c.bf16 (!%p270_p2), %v1303_v26, %v1302_v25  ;;  %v1510_v33 = vpack.c.bf16 (!%p270_p2), %v1309_v29, %v1308_v28  ;;  %v1311_v38 = vld [vmem:[%s1863_s4 + $0x58] sm:$0xff] (!%p270_p2)  ;;  %v1312_v40 = vld [vmem:[%s1863_s4 + $0x60] sm:$0xff] (!%p270_p2)  ;;  %v1313_v41 = vld [vmem:[%s1863_s4 + $0x68] sm:$0xff] (!%p270_p2) }
   0xb   : > { %vm320_vm2 = vcmp.eq.s32.totalorder (!%p270_p2), %v1645_v7, %v319_v11  ;;  %vm324_vm3 = vcmp.eq.s32.totalorder (!%p270_p2), %v323_v12, %v318_v8  ;;  %v1513_v39 = vpack.c.bf16 (!%p270_p2), %v1311_v38, %v1310_v37  ;;  %v1516_v42 = vpack.c.bf16 (!%p270_p2), %v1313_v41, %v1312_v40  ;;  %v1314_v43 = vld [vmem:[%s1863_s4 + $0x70] sm:$0xff] (!%p270_p2)  ;;  %v1315_v44 = vld [vmem:[%s1863_s4 + $0x78] sm:$0xff] (!%p270_p2)  ;;  %v1305_v50 = vld [vmem:[%s1862_s3] ss:$0 sm:$0xff] (!%p270_p2) }
   0xc   : > { %v1672_v18 = vsel (!%p270_p2), %vm320_vm2, 1.0, %v1572_v3  ;;  %1496 = vmatpush3.bf16.msra.mxu0 (!%p270_p2), %v1495_v10  ;;  %v1680_v20 = vsel (!%p270_p2), %vm324_vm3, 1.0, %v1572_v3  ;;  %v1519_v45 = vpack.c.bf16 (!%p270_p2), %v1315_v44, %v1314_v43  ;;  %v1318_v54 = vld [vmem:[%s1863_s4 + $0x80] sm:$0xff] (!%p270_p2)  ;;  %v1319_v55 = vld [vmem:[%s1863_s4 + $0x88] sm:$0xff] (!%p270_p2)  ;;  %v1320_v60 = vld [vmem:[%s1863_s4 + $0x90] sm:$0xff] (!%p270_p2)  ;;  %v1131_v40 = vsub.s32 (!%p270_p2), 1, %v1645_v7 }
   0xd   : > { %s1869_s28 = smov (!%p304_p3, %s1283_s28), 1  ;;  %1503 = vmatprep.subr.bf16.mxu0 %v1574_v9  ;;  %v859_v57 = vld [vmem:[%s1863_s4] sm:$0xff]  ;;  %v860_v58 = vld [vmem:[%s1863_s4 + $0x8] sm:$0xff]  ;;  %v1534_v59 = vpack.c.bf16 %v1319_v55, %v1318_v54  ;;  %v1321_v61 = vld [vmem:[%s1863_s4 + $0x98] sm:$0xff] }
   0xe   : > { %s1288_s15 = sshll.u32 %s1869_s28, 3  ;;  %v1522_v62 = vpack.c.bf16 %v860_v58, %v859_v57  ;;  %v861_v63 = vld [vmem:[%s1863_s4 + $0x10] sm:$0xff]  ;;  %v862_v0 = vld [vmem:[%s1863_s4 + $0x18] sm:$0xff]  ;;  %v1537_v1 = vpack.c.bf16 %v1321_v61, %v1320_v60  ;;  %v1322_v2 = vld [vmem:[%s1863_s4 + $0xa0] sm:$0xff]  ;;  %s310_s29 = scalar_lea.vmem %s1860_s1, %s1869_s28 }
   0xf   : > { %s307_s18 = scalar_lea.vmem %s1859_s0, %s1288_s15  ;;  %v1323_v4 = vld [vmem:[%s1863_s4 + $0xa8] sm:$0xff]  ;;  %v1525_v5 = vpack.c.bf16 %v862_v0, %v861_v63  ;;  %v863_v6 = vld [vmem:[%s1863_s4 + $0x20] sm:$0xff]  ;;  %v865_v12 = vld [vmem:[%s1863_s4 + $0x30] sm:$0xff]  ;;  %s314_s14 = scalar_lea.vmem %s1867_s8, %s1288_s15 }
  0x10   : > { %v327_v15 = vld [vmem:[%s307_s18] sm:$0xff]  ;;  %v864_v8 = vld [vmem:[%s1863_s4 + $0x28] sm:$0xff]  ;;  %v1540_v10 = vpack.c.bf16 %v1323_v4, %v1322_v2  ;;  %v866_v13 = vld [vmem:[%s1863_s4 + $0x38] sm:$0xff] }
  0x11   : > { %1382 = vmatpush3.msra.mxu1 %v327_v15  ;;  %1400 = vmatmul.mubr.msk.f32.vlgmr.msra.gmra.mrb[0].mxu0 %vm484_vm4, %v327_v15  ;;  %v1528_v11 = vpack.c.bf16 %v864_v8, %v863_v6  ;;  %v1531_v14 = vpack.c.bf16 %v866_v13, %v865_v12  ;;  %v1118_v16 = vld [vmem:[%s1865_s6 + $0x18] sm:$0xff]  ;;  %v1120_v22 = vld [vmem:[%s1865_s6 + $0x28] sm:$0xff]  ;;  %v1121_v28 = vld [vmem:[%s1865_s6 + $0x30] sm:$0xff] }
  0x12   : > { %1384 = vmatmul.mubr.msk.f32.vlgmr.msra.gmra.mrb[0].mxu1 %vm328_vm1, %v1672_v18  ;;  %1386 = vmatprep.subr.mxu1 %v1572_v3  ;;  %v1122_v23 = vld [vmem:[%s1865_s6 + $0x38] sm:$0xff] }
  0x13   : > { %1387 = vmatpush3.msra.mxu1 %v327_v15  ;;  %1388 = vmatprep.mubr.msk.f32.mxu1 %vm1573_vm0, %v1572_v3  ;;  %v1116_v15 = vld [vmem:[%s1865_s6 + $0x8] sm:$0xff]  ;;  %v1549_v26 = vpack.c.bf16 %v1122_v23, %v1120_v22 }
  0x14   : > { %1497 = vmatprep.subr.bf16.mxu1 %v1574_v9  ;;  %1421 = vmatprep.mubr.msk.f32.mxu0 %vm1573_vm0, %v1572_v3  ;;  %v1545_v17 = vpack.c.bf16 %v1118_v16, %v1116_v15 }
  0x15   : > { %1505 = vmatpush3.bf16.msra.mxu0 %v1504_v19  ;;  %v1325_v19 = vld [vmem:[%s1863_s4 + $0xb8] sm:$0xff] }
  0x16   : > { %1389 = vmatmul.mubr.msk.f32.vlgmr.msra.gmra.mrb[2].mxu1 %vm328_vm1, %v1680_v20  ;;  %1506 = vmatprep.subr.bf16.mxu0 %v1574_v9 }
  0x17   : > { %1499 = vmatpush3.bf16.msra.mxu1 %v1498_v21  ;;  %1410 = vmatprep.mubr.msk.f32.mxu1 %vm1573_vm0, %v1572_v3  ;;  %v1117_v21 = vld [vmem:[%s1865_s6 + $0x10] sm:$0xff] }
  0x18   : > { %1500 = vmatprep.subr.bf16.mxu1 %v1574_v9 }
  0x19   : > { %1508 = vmatpush3.bf16.msra.mxu0 %v1507_v27  ;;  %v1119_v27 = vld [vmem:[%s1865_s6 + $0x20] sm:$0xff] }
  0x1a   : > { %1509 = vmatprep.subr.bf16.mxu0 %v1574_v9 }
  0x1b   : > { %1502 = vmatpush3.bf16.msra.mxu1 %v1501_v24 }
  0x1c   : > { %1424 = vmatprep.subr.mxu1 %v1572_v3 }
  0xe4   : > { %v554_v32 = vpop.f32.mrb[0].mxu0 }
  0xe5   : > { %v398_v30 = vpop.f32.mrb[0].mxu1  ;;  %v1401_v34 = vpop.f32.mrb[1].mxu0 }
  0xe6   : > { %v1385_v31 = vpop.f32.mrb[1].mxu1  ;;  %1411 = vmatmul.mubr.msk.f32.vlgmr.msra.gmra.mrb[4].mxu1 %vm484_vm4, %v398_v30 }
  0xe7   : > { %1426 = vmatprep.mubr.msk.f32.mxu1 %vm1573_vm0, %v1572_v3 }
  0xe9   : > { %v471_v35 = vpop.f32.mrb[2].mxu1 }
  0xea   : > { %v1390_v36 = vpop.f32.mrb[3].mxu1  ;;  %1422 = vmatmul.mubr.msk.f32.vlgmr.msra.gmra.mrb[2].mxu0 %vm484_vm4, %v471_v35  ;;  %v1114_v35 = vld [vmem:[%s310_s29] sm:$0x1] }
  0xeb   : > { %1511 = vmatpush3.bf16.msra.mxu0 %v1510_v33  ;;  %1450 = vmatprep.mubr.msk.f32.mxu0 %vm1573_vm0, %v1572_v3 }
  0xec   : > { %1512 = vmatprep.subr.bf16.mxu0 %v1574_v9 }
  0xef   : > { %1514 = vmatpush3.bf16.msra.mxu0 %v1513_v39  ;;  %v1127_v39 = vsub.s32 0, %v1645_v7 }
  0xf0   : > { %1515 = vmatprep.subr.bf16.mxu0 %v1574_v9 }
  0xf3   : > { %1517 = vmatpush3.bf16.msra.mxu0 %v1516_v42 }
  0xf4   : > { %1518 = vmatprep.subr.bf16.mxu0 %v1574_v9 }
  0xf7   : > { %1520 = vmatpush3.bf16.msra.mxu0 %v1519_v45 }
  0xf8   : > { %1533 = vmatprep.subr.bf16.mxu0 %v1574_v9 }
 0x1b9   : > { %v627_v46 = vpop.f32.mrb[4].mxu1 }
 0x1ba   : > { %v628_v47 = vadd.f32 %v627_v46, %v554_v32  ;;  %v1412_v48 = vpop.f32.mrb[5].mxu1  ;;  %v1551_v32 = vpack.c.bf16 %v1121_v28, %v1119_v27  ;;  %v1327_v46 = vld [vmem:[%s1864_s5] ss:$0 sm:$0xff] }
 0x1bd   : > { %v705_v49 = vpop.f32.mrb[2].mxu0 }
 0x1be   : > { %v709_v51 = vadd.f32 %v705_v49, %v628_v47  ;;  %v1423_v52 = vpop.f32.mrb[3].mxu0 }
 0x1c0   : > { %v717_v53 = vadd.f32 %v1305_v50, %v709_v51 }
 0x1c2   : > { %v718_v56 = vmax.f32 %v717_v53, 0.0 }
 0x1c4   : > { %1425 = vmatpush3.msra.mxu1 %v718_v56  ;;  %1451 = vmatmul.mubr.msk.f32.vlgmr.msra.gmra.mrb[4].mxu0 %vm876_vm5, %v718_v56 }
 0x1c5   : > { %1427 = vmatmul.mubr.msk.f32.vlgmr.msra.gmra.mrb[6].mxu1 %vm328_vm1, %v1672_v18  ;;  %1429 = vmatprep.subr.mxu1 %v1572_v3  ;;  %v1324_v18 = vld [vmem:[%s1863_s4 + $0xb0] sm:$0xff] }
 0x1c6   : > { %1430 = vmatpush3.msra.mxu1 %v718_v56  ;;  %1431 = vmatprep.mubr.msk.f32.mxu1 %vm1573_vm0, %v1572_v3 }
 0x1c7   : > { %1521 = vmatprep.subr.bf16.mxu1 %v1574_v9  ;;  %1535 = vmatpush3.bf16.msra.mxu0 %v1534_v59 }
 0x1c8   : > { %1536 = vmatprep.subr.bf16.mxu0 %v1574_v9  ;;  %1488 = vmatprep.mubr.msk.f32.mxu0 %vm1573_vm0, %v1572_v3 }
 0x1c9   : > { %1432 = vmatmul.mubr.msk.f32.vlgmr.msra.gmra.mrb[8].mxu1 %vm328_vm1, %v1680_v20  ;;  %v1115_v20 = vld [vmem:[%s1865_s6] sm:$0xff] }
 0x1ca   : > { %1523 = vmatpush3.bf16.msra.mxu1 %v1522_v62  ;;  %1469 = vmatprep.mubr.msk.f32.mxu1 %vm1573_vm0, %v1572_v3  ;;  %v1547_v24 = vpack.c.bf16 %v1117_v21, %v1115_v20 }
 0x1cb   : > { %1524 = vmatprep.subr.bf16.mxu1 %v1574_v9  ;;  %1538 = vmatpush3.bf16.msra.mxu0 %v1537_v1 }
 0x1cc   : > { %1539 = vmatprep.subr.bf16.mxu0 %v1574_v9 }
 0x1ce   : > { %1526 = vmatpush3.bf16.msra.mxu1 %v1525_v5 }
 0x1cf   : > { %1527 = vmatprep.subr.bf16.mxu1 %v1574_v9  ;;  %1541 = vmatpush3.bf16.msra.mxu0 %v1540_v10 }
 0x1d0   : > { %1542 = vmatprep.subr.bf16.mxu0 %v1574_v9 }
 0x1d2   : > { %1529 = vmatpush3.bf16.msra.mxu1 %v1528_v11 }
 0x1d3   : > { %1530 = vmatprep.subr.bf16.mxu1 %v1574_v9  ;;  %v1543_v9 = vpack.c.bf16 %v1325_v19, %v1324_v18 }
 0x1d5   : > { %1544 = vmatpush3.bf16.msra.mxu0 %v1543_v9 }
 0x1d6   : > { %1532 = vmatpush3.bf16.msra.mxu1 %v1531_v14 }
 0x1d7   : > { %1546 = vmatprep.subr.bf16.mxu1 %v1545_v17 }
 0x297   : > { %v946_v25 = vpop.f32.mrb[4].mxu0 }
 0x298   : > { %v785_v29 = vpop.f32.mrb[6].mxu1  ;;  %v1452_v30 = vpop.f32.mrb[5].mxu0 }
 0x299   : > { %1470 = vmatmul.mubr.msk.f32.vlgmr.msra.gmra.mrb[10].mxu1 %vm876_vm5, %v785_v29  ;;  %v1428_v31 = vpop.f32.mrb[7].mxu1 }
 0x29a   : > { %1548 = vmatpush1.bf16.msra.mxu1 %v1547_v24  ;;  %1202 = vmatprep.mubr.f32.mxu1 %v1572_v3  ;;  %v1123_v3 = vld [vmem:[%s1866_s7] sm:$0x3] }
 0x29b   : > { %1550 = vmatprep.subr.bf16.mxu1 %v1549_v26  ;;  %v1128_v43 = vrot.slane %v1123_v3, %v1127_v39  ;;  %v1132_v45 = vrot.slane %v1123_v3, %v1131_v40 }
 0x29c   : > { %v855_v33 = vpop.f32.mrb[8].mxu1 }
 0x29d   : > { %1489 = vmatmul.mubr.msk.f32.vlgmr.msra.gmra.mrb[6].mxu0 %vm876_vm5, %v855_v33  ;;  %v1433_v34 = vpop.f32.mrb[9].mxu1 }
 0x29e   : > { %1552 = vmatpush1.bf16.msra.mxu1 %v1551_v32 }
 0x2a1   : > { %1328 = vmatmul.mubr.msk.f32.vlgmr.msra.gmra.mrb[12].mxu1 %vm484_vm4, %v1114_v35 }
 0x36c   : > { %v1019_v36 = vpop.f32.mrb[10].mxu1 }
 0x36d   : > { %v1020_v37 = vadd.f32 %v1019_v36, %v946_v25  ;;  %v1471_v38 = vpop.f32.mrb[11].mxu1 }
 0x370   : > { %v1101_v41 = vpop.f32.mrb[6].mxu0 }
 0x371   : > { %v1105_v42 = vadd.f32 %v1101_v41, %v1020_v37  ;;  %v1490_v44 = vpop.f32.mrb[7].mxu0 }
 0x373   : > { %v1113_v51 = vadd.f32 %v1327_v46, %v1105_v42 }
 0x374   : > { %v1204_v47 = vpop.f32.mrb[12].mxu1 }
 0x375   : > { %v1205_v48 = vadd.f32 %v1204_v47, %v1128_v43  ;;  %v1206_v49 = vpop.f32.mrb[13].mxu1 }
 0x376   : > { %v1207_v50 = vadd.f32 %v1206_v49, %v1132_v45 }
 0x377   : > { %v1212_v52 = vrot.slane %v1205_v48, %v1127_v39 }
 0x378   : > { %v1217_v53 = vrot.slane %v1207_v50, %v1127_v39 }
 0x379   : > { %v1213_v54 = vmul.f32 %v1212_v52, %v1113_v51 }
 0x37b   : > { %v1218_v55 = vadd.f32 %v1217_v53, %v1213_v54 }
 0x37d   : > { %v1219_v7 = vmax.f32 %v1218_v55, 0.0 }
 0x37f   : > { %1220 = vst [vmem:[%s314_s14] sm:$0xff] %v1219_v7 }
 0x380 PF: > { %s18_s27 = sadd.s32 1, %s1570_s27  }
 0x381   : > { %p15_p4 = scmp.ge.s32.totalorder %s18_s27, 4  }
 0x383   :  { %17 = sbr.rel (!%p15_p4) target bundleno = 1 (0x1), region = 89 }

</bundles_post_ra>
